<compile_context>
chip_gen: v5e
topology: v5e:2x2
jax: 0.10.0
libtpu: 0.0.40
codegen_flags: <defaults>
</compile_context>

<pallas_src>
import math

import jax
import jax.numpy as jnp
from jax.experimental import pallas as pl
from jax.experimental.pallas import tpu as pltpu

# MXU operand dtype: bf16 on real TPU (f32 accumulation via preferred_element_type); f32
# fallback elsewhere (interpret/CPU dot does not implement BF16 x BF16 = F32).
MATMUL_DTYPE = jnp.bfloat16 if jax.default_backend() == "tpu" else jnp.float32


def _layernorm(h, gamma, beta, eps=1e-5):
    mean = jnp.mean(h, axis=-1, keepdims=True)
    var = jnp.mean((h - mean) ** 2, axis=-1, keepdims=True)      # unbiased=False
    return (h - mean) / jnp.sqrt(var + eps) * gamma + beta


def attn_kernel(x_ref, g1_ref, be1_ref, wqkv_ref, ctxt_ref):
    """Per-batch-element: LayerNorm1 -> fused QKV -> causal single-head SDPA.

    Writes the context TRANSPOSED, shape (D, T): torch's flash branch does
    context.transpose(1,2).contiguous().view(b, T, D); doing the transpose here on the VMEM
    tile makes the remaining view a free row-major reshape in the wrapper.
    """
    x = x_ref[0]                                                  # (T, D) f32
    h = _layernorm(x, g1_ref[...], be1_ref[...])

    T, D = x.shape
    # One wide (D, 3D) MXU matmul instead of three narrow pushes; weight already MATMUL_DTYPE.
    qkv = jnp.dot(h.astype(MATMUL_DTYPE), wqkv_ref[...],
                  preferred_element_type=jnp.float32)             # (T, 3D) f32 accum
    # SDPA default scale = 1/sqrt(E) with E = d_out (q/k/v are un-split -> faithful). Fold the
    # scale into q: T*D multiplies instead of T*T on the score matrix.
    q = qkv[:, :D] * (1.0 / math.sqrt(D))
    k = qkv[:, D:2 * D]
    v = qkv[:, 2 * D:]

    # q @ k^T via dot_general contracting the feature dims: MXU consumes the transposed
    # operand directly, no k.T materialization / XLU pass.
    scores = jax.lax.dot_general(
        q.astype(MATMUL_DTYPE), k.astype(MATMUL_DTYPE),
        dimension_numbers=(((1,), (1,)), ((), ())),
        preferred_element_type=jnp.float32)                       # (T, T) f32

    # is_causal=True. Large finite negative (not finfo.min / -inf) so (mask - rowmax) cannot
    # overflow to -inf; masked terms still underflow to exactly 0 after exp.
    row = jax.lax.broadcasted_iota(jnp.int32, (T, T), 0)
    col = jax.lax.broadcasted_iota(jnp.int32, (T, T), 1)
    scores = jnp.where(col > row, -1e30, scores)

    m = jnp.max(scores, axis=-1, keepdims=True)
    p = jnp.exp(scores - m)
    l = jnp.sum(p, axis=-1, keepdims=True)

    ctx = jnp.dot(p.astype(MATMUL_DTYPE), v.astype(MATMUL_DTYPE),
                  preferred_element_type=jnp.float32)             # (T, D) f32
    ctx = ctx / l                                                 # exact softmax normalization

    # torch's transpose(1,2) done on the VMEM tile (XLU); lane-dense when T % 128 == 0.
    ctxt_ref[0] = ctx.T                                           # (D, T)


def ffn_kernel(x_ref, ctx_ref, wo_ref, bo_ref, g2_ref, be2_ref,
               w1_ref, b1_ref, w2_ref, b2_ref, o_ref):
    """Row-tiled: out_proj + residual -> LayerNorm2 -> FF(GELU) + residual.

    Operates on (tm, D) row blocks of the flattened (padded B*T, D) tensors; everything here
    is purely row-wise so batch and tokens are fused into one tiled axis.
    """
    x = x_ref[...]                                                # (tm, D) residual rows
    ctx = ctx_ref[...]                                            # (tm, D) scrambled context

    attn_out = jnp.dot(ctx.astype(MATMUL_DTYPE), wo_ref[...],
                       preferred_element_type=jnp.float32) + bo_ref[...]
    x1 = x + attn_out                                             # drop_shortcut = identity

    h = _layernorm(x1, g2_ref[...], be2_ref[...])
    a = jnp.dot(h.astype(MATMUL_DTYPE), w1_ref[...],
                preferred_element_type=jnp.float32) + b1_ref[...]
    a = 0.5 * a * (1.0 + jax.lax.erf(a * 0.7071067811865476))     # exact GELU (nn.GELU default)
    ff = jnp.dot(a.astype(MATMUL_DTYPE), w2_ref[...],
                 preferred_element_type=jnp.float32) + b2_ref[...]

    o_ref[...] = x1 + ff


def _row_tile(rows):
    """Target 256-row LHS tiles (feeds the 256-wide v6e/v7x MXU, ~85% of HBM roofline);
    small problems take everything (rounded up to a sublane multiple)."""
    if rows >= 256:
        return 256
    return max(8, ((rows + 7) // 8) * 8)


def transformer_block(x, params):
    B, T, D = x.shape
    H = 4 * D
    f32 = jnp.float32
    # 64 MiB scoped VMEM: full budget on v7x (64 MiB physical), half of v5e/v6e's 128 MiB
    # (those can be pushed to 96 MiB for even larger row tiles / full weight residency).
    cp = pltpu.CompilerParams(dimension_semantics=("parallel",),
                              vmem_limit_bytes=64 * 1024 * 1024)

    # --- kernel 1: LN1 + fused QKV + causal single-head SDPA; context written transposed ---
    ctx_t = pl.pallas_call(
        attn_kernel,
        out_shape=jax.ShapeDtypeStruct((B, D, T), f32),
        grid=(B,),
        in_specs=[
            pl.BlockSpec((1, T, D), lambda b: (b, 0, 0)),         # x
            pl.BlockSpec((1, D), lambda b: (0, 0)),               # gamma1
            pl.BlockSpec((1, D), lambda b: (0, 0)),               # beta1
            pl.BlockSpec((D, 3 * D), lambda b: (0, 0)),           # fused Wqkv (DMA'd once)
        ],
        out_specs=pl.BlockSpec((1, D, T), lambda b: (b, 0, 0)),
        compiler_params=cp,
    )(x, params["g1"], params["be1"], params["wqkv"])

    # Torch flash-branch scramble: transpose(1,2).contiguous().view(b, T, D). The transpose
    # already happened in-kernel, so this reshape preserves flat row-major order -> free.
    ctx_rows = ctx_t.reshape(B * T, D)
    x_rows = x.reshape(B * T, D)

    rows = B * T
    tm = _row_tile(rows)
    padded = pl.cdiv(rows, tm) * tm
    if padded != rows:
        pad = padded - rows
        x_rows = jnp.pad(x_rows, ((0, pad), (0, 0)))              # zero rows are LN/GELU-safe
        ctx_rows = jnp.pad(ctx_rows, ((0, pad), (0, 0)))

    # --- kernel 2: out_proj + residual + LN2 + FeedForward + residual, tiled over rows ---
    # Weights use constant index maps so Pallas DMAs them once across the row grid.
    out_rows = pl.pallas_call(
        ffn_kernel,
        out_shape=jax.ShapeDtypeStruct((padded, D), f32),
        grid=(padded // tm,),
        in_specs=[
            pl.BlockSpec((tm, D), lambda i: (i, 0)),              # x rows (residual)
            pl.BlockSpec((tm, D), lambda i: (i, 0)),              # scrambled context rows
            pl.BlockSpec((D, D), lambda i: (0, 0)),               # Wo
            pl.BlockSpec((1, D), lambda i: (0, 0)),               # bo
            pl.BlockSpec((1, D), lambda i: (0, 0)),               # gamma2
            pl.BlockSpec((1, D), lambda i: (0, 0)),               # beta2
            pl.BlockSpec((D, H), lambda i: (0, 0)),               # W1
            pl.BlockSpec((1, H), lambda i: (0, 0)),               # b1
            pl.BlockSpec((H, D), lambda i: (0, 0)),               # W2
            pl.BlockSpec((1, D), lambda i: (0, 0)),               # b2
        ],
        out_specs=pl.BlockSpec((tm, D), lambda i: (i, 0)),
        compiler_params=cp,
    )(x_rows, ctx_rows, params["wo"], params["bo"], params["g2"], params["be2"],
      params["w1"], params["bb1"], params["w2"], params["bb2"])

    return out_rows[:rows].reshape(B, T, D)


def init_params(key, D):
    H = 4 * D
    ks = jax.random.split(key, 8)
    nrm = lambda k, shape: (0.02 * jax.random.normal(k, shape)).astype(jnp.float32)
    md = MATMUL_DTYPE
    wq, wk, wv = nrm(ks[0], (D, D)), nrm(ks[1], (D, D)), nrm(ks[2], (D, D))
    return {
        # LayerNorm params (as in __init__: ones / zeros), kept f32
        "g1": jnp.ones((1, D), jnp.float32), "be1": jnp.zeros((1, D), jnp.float32),
        "g2": jnp.ones((1, D), jnp.float32), "be2": jnp.zeros((1, D), jnp.float32),
        # attention: W_query/W_key/W_value fused + pre-cast once (qkv_bias=False); out_proj has bias
        "wqkv": jnp.concatenate([wq, wk, wv], axis=1).astype(md),
        "wo": nrm(ks[3], (D, D)).astype(md), "bo": nrm(ks[4], (1, D)),
        # feed-forward (weights pre-cast to the MXU operand dtype; biases f32)
        "w1": nrm(ks[5], (D, H)).astype(md), "bb1": nrm(ks[6], (1, H)),
        "w2": nrm(ks[7], (H, D)).astype(md), "bb2": jnp.zeros((1, D), jnp.float32),
    }


if __name__ == "__main__":
    # config: embed_dim=32, context_length=8, n_heads=4, drop_rate=0.1 (eval), qkv_bias=False
    B, T, D = 2, 8, 32
    key = jax.random.PRNGKey(0)
    kx, kp = jax.random.split(key)
    x = jax.random.normal(kx, (B, T, D), dtype=jnp.float32)
    params = init_params(kp, D)

    out = jax.jit(transformer_block)(x, params)
    jax.block_until_ready(out)
    assert out.shape == (B, T, D)
    assert bool(jnp.all(jnp.isfinite(out)))
    print("KERNEL_OK")
</pallas_src>

<mosaic_0001>
module attributes {stable_mosaic.version = 11 : i64} {
  func.func @attn_kernel(%arg0: i32, %arg1: memref<1x8x32xf32, #tpu.memory_space<vmem>>, %arg2: memref<1x32xf32, #tpu.memory_space<vmem>>, %arg3: memref<1x32xf32, #tpu.memory_space<vmem>>, %arg4: memref<32x96xf32, #tpu.memory_space<vmem>>, %arg5: memref<1x32x8xf32, #tpu.memory_space<vmem>>) attributes {dimension_semantics = [#tpu.dimension_semantics<parallel>], iteration_bounds = array<i64: 2>, scalar_prefetch = 0 : i64, scratch_operands = 0 : i64, tpu.core_type = #tpu.core_type<tc>, window_params = [{transform_indices = @transform_0, window_bounds = array<i64: 1, 8, 32>}, {pipeline_mode = #tpu.pipeline_mode<synchronous>, transform_indices = @transform_1, window_bounds = array<i64: 1, 32>}, {pipeline_mode = #tpu.pipeline_mode<synchronous>, transform_indices = @transform_2, window_bounds = array<i64: 1, 32>}, {pipeline_mode = #tpu.pipeline_mode<synchronous>, transform_indices = @transform_3, window_bounds = array<i64: 32, 96>}, {transform_indices = @transform_4, window_bounds = array<i64: 1, 32, 8>}]} {
    %c0 = arith.constant 0 : index
    %c0_0 = arith.constant 0 : index
    %c0_1 = arith.constant 0 : index
    %0 = vector.load %arg1[%c0, %c0_0, %c0_1] : memref<1x8x32xf32, #tpu.memory_space<vmem>>, vector<1x8x32xf32>
    %1 = vector.shape_cast %0 : vector<1x8x32xf32> to vector<8x32xf32>
    %c0_2 = arith.constant 0 : index
    %c0_3 = arith.constant 0 : index
    %2 = vector.load %arg2[%c0_2, %c0_3] : memref<1x32xf32, #tpu.memory_space<vmem>>, vector<1x32xf32>
    %c0_4 = arith.constant 0 : index
    %c0_5 = arith.constant 0 : index
    %3 = vector.load %arg3[%c0_4, %c0_5] : memref<1x32xf32, #tpu.memory_space<vmem>>, vector<1x32xf32>
    %cst = arith.constant dense<0.000000e+00> : vector<8xf32>
    %4 = vector.multi_reduction <add>, %1, %cst [1] : vector<8x32xf32> to vector<8xf32>
    %5 = vector.shape_cast %4 : vector<8xf32> to vector<8x1xf32>
    %cst_6 = arith.constant 3.200000e+01 : f32
    %6 = vector.broadcast %cst_6 : f32 to vector<8x1xf32>
    %7 = arith.divf %5, %6 : vector<8x1xf32>
    %8 = vector.broadcast %7 : vector<8x1xf32> to vector<8x32xf32>
    %9 = arith.subf %1, %8 : vector<8x32xf32>
    %10 = arith.mulf %9, %9 : vector<8x32xf32>
    %cst_7 = arith.constant dense<0.000000e+00> : vector<8xf32>
    %11 = vector.multi_reduction <add>, %10, %cst_7 [1] : vector<8x32xf32> to vector<8xf32>
    %12 = vector.shape_cast %11 : vector<8xf32> to vector<8x1xf32>
    %cst_8 = arith.constant 3.200000e+01 : f32
    %13 = vector.broadcast %cst_8 : f32 to vector<8x1xf32>
    %14 = arith.divf %12, %13 : vector<8x1xf32>
    %15 = vector.broadcast %7 : vector<8x1xf32> to vector<8x32xf32>
    %16 = arith.subf %1, %15 : vector<8x32xf32>
    %cst_9 = arith.constant 9.99999974E-6 : f32
    %17 = vector.broadcast %cst_9 : f32 to vector<8x1xf32>
    %18 = arith.addf %14, %17 : vector<8x1xf32>
    %19 = math.sqrt %18 : vector<8x1xf32>
    %20 = vector.broadcast %19 : vector<8x1xf32> to vector<8x32xf32>
    %21 = arith.divf %16, %20 : vector<8x32xf32>
    %22 = vector.broadcast %2 : vector<1x32xf32> to vector<8x32xf32>
    %23 = arith.mulf %21, %22 : vector<8x32xf32>
    %24 = vector.broadcast %3 : vector<1x32xf32> to vector<8x32xf32>
    %25 = arith.addf %23, %24 : vector<8x32xf32>
    %c0_10 = arith.constant 0 : index
    %c0_11 = arith.constant 0 : index
    %26 = vector.load %arg4[%c0_10, %c0_11] : memref<32x96xf32, #tpu.memory_space<vmem>>, vector<32x96xf32>
    %cst_12 = arith.constant dense<0.000000e+00> : vector<8x96xf32>
    %27 = tpu.matmul %25, %26, %cst_12 {dimension_numbers = #tpu.dot_dimension_numbers<[1], [0], [0], [1], [0, 0, 1, 1], [], []>} : vector<8x32xf32>, vector<32x96xf32>, vector<8x96xf32> -> vector<8x96xf32>
    %28 = vector.extract_strided_slice %27 {offsets = [0, 0], sizes = [8, 32], strides = [1, 1]} : vector<8x96xf32> to vector<8x32xf32>
    %cst_13 = arith.constant 0.176776692 : f32
    %29 = vector.broadcast %cst_13 : f32 to vector<8x32xf32>
    %30 = arith.mulf %28, %29 : vector<8x32xf32>
    %31 = vector.extract_strided_slice %27 {offsets = [0, 32], sizes = [8, 32], strides = [1, 1]} : vector<8x96xf32> to vector<8x32xf32>
    %32 = vector.extract_strided_slice %27 {offsets = [0, 64], sizes = [8, 32], strides = [1, 1]} : vector<8x96xf32> to vector<8x32xf32>
    %cst_14 = arith.constant dense<0.000000e+00> : vector<8x8xf32>
    %33 = tpu.matmul %30, %31, %cst_14 {dimension_numbers = #tpu.dot_dimension_numbers<[1], [1], [0], [0], [0, 0, 1, 0], [], []>} : vector<8x32xf32>, vector<8x32xf32>, vector<8x8xf32> -> vector<8x8xf32>
    %34 = tpu.iota {dimensions = array<i32: 0>} : vector<8x8xi32>
    %35 = tpu.iota {dimensions = array<i32: 1>} : vector<8x8xi32>
    %36 = arith.cmpi sgt, %35, %34 : vector<8x8xi32>
    %cst_15 = arith.constant -1.000000e+30 : f32
    %37 = vector.broadcast %cst_15 : f32 to vector<8x8xf32>
    %38 = arith.select %36, %37, %33 : vector<8x8xi1>, vector<8x8xf32>
    %cst_16 = arith.constant dense<0xFF800000> : vector<8xf32>
    %39 = vector.multi_reduction <maximumf>, %38, %cst_16 [1] : vector<8x8xf32> to vector<8xf32>
    %40 = vector.shape_cast %39 : vector<8xf32> to vector<8x1xf32>
    %41 = vector.broadcast %40 : vector<8x1xf32> to vector<8x8xf32>
    %42 = arith.subf %38, %41 : vector<8x8xf32>
    %43 = math.exp %42 : vector<8x8xf32>
    %cst_17 = arith.constant dense<0.000000e+00> : vector<8xf32>
    %44 = vector.multi_reduction <add>, %43, %cst_17 [1] : vector<8x8xf32> to vector<8xf32>
    %45 = vector.shape_cast %44 : vector<8xf32> to vector<8x1xf32>
    %cst_18 = arith.constant dense<0.000000e+00> : vector<8x32xf32>
    %46 = tpu.matmul %43, %32, %cst_18 {dimension_numbers = #tpu.dot_dimension_numbers<[1], [0], [0], [1], [0, 0, 1, 1], [], []>} : vector<8x8xf32>, vector<8x32xf32>, vector<8x32xf32> -> vector<8x32xf32>
    %47 = vector.broadcast %45 : vector<8x1xf32> to vector<8x32xf32>
    %48 = arith.divf %46, %47 : vector<8x32xf32>
    %49 = tpu.transpose %48, [1, 0] : vector<8x32xf32> -> vector<32x8xf32>
    %c0_19 = arith.constant 0 : index
    %c0_20 = arith.constant 0 : index
    %c0_21 = arith.constant 0 : index
    %50 = vector.load %arg5[%c0_19, %c0_20, %c0_21] : memref<1x32x8xf32, #tpu.memory_space<vmem>>, vector<1x32x8xf32>
    %51 = vector.shape_cast %50 : vector<1x32x8xf32> to vector<32x8xf32>
    %52 = vector.shape_cast %49 : vector<32x8xf32> to vector<1x32x8xf32>
    tpu.vector_store %arg5[%c0_19, %c0_20, %c0_21], %52 {strides = array<i32>} : memref<1x32x8xf32, #tpu.memory_space<vmem>>, vector<1x32x8xf32>,
    return
  }
  func.func @transform_0(%arg0: i32) -> (i32, i32, i32) {
    %c0_i32 = arith.constant 0 : i32
    %c0_i32_0 = arith.constant 0 : i32
    %c0_i32_1 = arith.constant 0 : i32
    return %arg0, %c0_i32, %c0_i32_0 : i32, i32, i32
  }
  func.func @transform_1(%arg0: i32) -> (i32, i32) {
    %c0_i32 = arith.constant 0 : i32
    %c0_i32_0 = arith.constant 0 : i32
    %c0_i32_1 = arith.constant 0 : i32
    return %c0_i32, %c0_i32_0 : i32, i32
  }
  func.func @transform_2(%arg0: i32) -> (i32, i32) {
    %c0_i32 = arith.constant 0 : i32
    %c0_i32_0 = arith.constant 0 : i32
    %c0_i32_1 = arith.constant 0 : i32
    return %c0_i32, %c0_i32_0 : i32, i32
  }
  func.func @transform_3(%arg0: i32) -> (i32, i32) {
    %c0_i32 = arith.constant 0 : i32
    %c0_i32_0 = arith.constant 0 : i32
    %c0_i32_1 = arith.constant 0 : i32
    return %c0_i32, %c0_i32_0 : i32, i32
  }
  func.func @transform_4(%arg0: i32) -> (i32, i32, i32) {
    %c0_i32 = arith.constant 0 : i32
    %c0_i32_0 = arith.constant 0 : i32
    %c0_i32_1 = arith.constant 0 : i32
    return %arg0, %c0_i32, %c0_i32_0 : i32, i32, i32
  }
}

module attributes {stable_mosaic.version = 11 : i64} {
  func.func @ffn_kernel(%arg0: i32, %arg1: memref<16x32xf32, #tpu.memory_space<vmem>>, %arg2: memref<16x32xf32, #tpu.memory_space<vmem>>, %arg3: memref<32x32xf32, #tpu.memory_space<vmem>>, %arg4: memref<1x32xf32, #tpu.memory_space<vmem>>, %arg5: memref<1x32xf32, #tpu.memory_space<vmem>>, %arg6: memref<1x32xf32, #tpu.memory_space<vmem>>, %arg7: memref<32x128xf32, #tpu.memory_space<vmem>>, %arg8: memref<1x128xf32, #tpu.memory_space<vmem>>, %arg9: memref<128x32xf32, #tpu.memory_space<vmem>>, %arg10: memref<1x32xf32, #tpu.memory_space<vmem>>, %arg11: memref<16x32xf32, #tpu.memory_space<vmem>>) attributes {dimension_semantics = [#tpu.dimension_semantics<parallel>], iteration_bounds = array<i64: 1>, scalar_prefetch = 0 : i64, scratch_operands = 0 : i64, tpu.core_type = #tpu.core_type<tc>, window_params = [{transform_indices = @transform_0, window_bounds = array<i64: 16, 32>}, {transform_indices = @transform_1, window_bounds = array<i64: 16, 32>}, {pipeline_mode = #tpu.pipeline_mode<synchronous>, transform_indices = @transform_2, window_bounds = array<i64: 32, 32>}, {pipeline_mode = #tpu.pipeline_mode<synchronous>, transform_indices = @transform_3, window_bounds = array<i64: 1, 32>}, {pipeline_mode = #tpu.pipeline_mode<synchronous>, transform_indices = @transform_4, window_bounds = array<i64: 1, 32>}, {pipeline_mode = #tpu.pipeline_mode<synchronous>, transform_indices = @transform_5, window_bounds = array<i64: 1, 32>}, {pipeline_mode = #tpu.pipeline_mode<synchronous>, transform_indices = @transform_6, window_bounds = array<i64: 32, 128>}, {pipeline_mode = #tpu.pipeline_mode<synchronous>, transform_indices = @transform_7, window_bounds = array<i64: 1, 128>}, {pipeline_mode = #tpu.pipeline_mode<synchronous>, transform_indices = @transform_8, window_bounds = array<i64: 128, 32>}, {pipeline_mode = #tpu.pipeline_mode<synchronous>, transform_indices = @transform_9, window_bounds = array<i64: 1, 32>}, {transform_indices = @transform_10, window_bounds = array<i64: 16, 32>}]} {
    %c0 = arith.constant 0 : index
    %c0_0 = arith.constant 0 : index
    %0 = vector.load %arg1[%c0, %c0_0] : memref<16x32xf32, #tpu.memory_space<vmem>>, vector<16x32xf32>
    %c0_1 = arith.constant 0 : index
    %c0_2 = arith.constant 0 : index
    %1 = vector.load %arg2[%c0_1, %c0_2] : memref<16x32xf32, #tpu.memory_space<vmem>>, vector<16x32xf32>
    %c0_3 = arith.constant 0 : index
    %c0_4 = arith.constant 0 : index
    %2 = vector.load %arg3[%c0_3, %c0_4] : memref<32x32xf32, #tpu.memory_space<vmem>>, vector<32x32xf32>
    %cst = arith.constant dense<0.000000e+00> : vector<16x32xf32>
    %3 = tpu.matmul %1, %2, %cst {dimension_numbers = #tpu.dot_dimension_numbers<[1], [0], [0], [1], [0, 0, 1, 1], [], []>} : vector<16x32xf32>, vector<32x32xf32>, vector<16x32xf32> -> vector<16x32xf32>
    %c0_5 = arith.constant 0 : index
    %c0_6 = arith.constant 0 : index
    %4 = vector.load %arg4[%c0_5, %c0_6] : memref<1x32xf32, #tpu.memory_space<vmem>>, vector<1x32xf32>
    %5 = vector.broadcast %4 : vector<1x32xf32> to vector<16x32xf32>
    %6 = arith.addf %3, %5 : vector<16x32xf32>
    %7 = arith.addf %0, %6 : vector<16x32xf32>
    %c0_7 = arith.constant 0 : index
    %c0_8 = arith.constant 0 : index
    %8 = vector.load %arg5[%c0_7, %c0_8] : memref<1x32xf32, #tpu.memory_space<vmem>>, vector<1x32xf32>
    %c0_9 = arith.constant 0 : index
    %c0_10 = arith.constant 0 : index
    %9 = vector.load %arg6[%c0_9, %c0_10] : memref<1x32xf32, #tpu.memory_space<vmem>>, vector<1x32xf32>
    %cst_11 = arith.constant dense<0.000000e+00> : vector<16xf32>
    %10 = vector.multi_reduction <add>, %7, %cst_11 [1] : vector<16x32xf32> to vector<16xf32>
    %11 = vector.shape_cast %10 : vector<16xf32> to vector<16x1xf32>
    %cst_12 = arith.constant 3.200000e+01 : f32
    %12 = vector.broadcast %cst_12 : f32 to vector<16x1xf32>
    %13 = arith.divf %11, %12 : vector<16x1xf32>
    %14 = vector.broadcast %13 : vector<16x1xf32> to vector<16x32xf32>
    %15 = arith.subf %7, %14 : vector<16x32xf32>
    %16 = arith.mulf %15, %15 : vector<16x32xf32>
    %cst_13 = arith.constant dense<0.000000e+00> : vector<16xf32>
    %17 = vector.multi_reduction <add>, %16, %cst_13 [1] : vector<16x32xf32> to vector<16xf32>
    %18 = vector.shape_cast %17 : vector<16xf32> to vector<16x1xf32>
    %cst_14 = arith.constant 3.200000e+01 : f32
    %19 = vector.broadcast %cst_14 : f32 to vector<16x1xf32>
    %20 = arith.divf %18, %19 : vector<16x1xf32>
    %21 = vector.broadcast %13 : vector<16x1xf32> to vector<16x32xf32>
    %22 = arith.subf %7, %21 : vector<16x32xf32>
    %cst_15 = arith.constant 9.99999974E-6 : f32
    %23 = vector.broadcast %cst_15 : f32 to vector<16x1xf32>
    %24 = arith.addf %20, %23 : vector<16x1xf32>
    %25 = math.sqrt %24 : vector<16x1xf32>
    %26 = vector.broadcast %25 : vector<16x1xf32> to vector<16x32xf32>
    %27 = arith.divf %22, %26 : vector<16x32xf32>
    %28 = vector.broadcast %8 : vector<1x32xf32> to vector<16x32xf32>
    %29 = arith.mulf %27, %28 : vector<16x32xf32>
    %30 = vector.broadcast %9 : vector<1x32xf32> to vector<16x32xf32>
    %31 = arith.addf %29, %30 : vector<16x32xf32>
    %c0_16 = arith.constant 0 : index
    %c0_17 = arith.constant 0 : index
    %32 = vector.load %arg7[%c0_16, %c0_17] : memref<32x128xf32, #tpu.memory_space<vmem>>, vector<32x128xf32>
    %cst_18 = arith.constant dense<0.000000e+00> : vector<16x128xf32>
    %33 = tpu.matmul %31, %32, %cst_18 {dimension_numbers = #tpu.dot_dimension_numbers<[1], [0], [0], [1], [0, 0, 1, 1], [], []>} : vector<16x32xf32>, vector<32x128xf32>, vector<16x128xf32> -> vector<16x128xf32>
    %c0_19 = arith.constant 0 : index
    %c0_20 = arith.constant 0 : index
    %34 = vector.load %arg8[%c0_19, %c0_20] : memref<1x128xf32, #tpu.memory_space<vmem>>, vector<1x128xf32>
    %35 = vector.broadcast %34 : vector<1x128xf32> to vector<16x128xf32>
    %36 = arith.addf %33, %35 : vector<16x128xf32>
    %cst_21 = arith.constant 5.000000e-01 : f32
    %37 = vector.broadcast %cst_21 : f32 to vector<16x128xf32>
    %38 = arith.mulf %37, %36 : vector<16x128xf32>
    %cst_22 = arith.constant 0.707106769 : f32
    %39 = vector.broadcast %cst_22 : f32 to vector<16x128xf32>
    %40 = arith.mulf %36, %39 : vector<16x128xf32>
    %41 = math.erf %40 : vector<16x128xf32>
    %cst_23 = arith.constant 1.000000e+00 : f32
    %42 = vector.broadcast %cst_23 : f32 to vector<16x128xf32>
    %43 = arith.addf %42, %41 : vector<16x128xf32>
    %44 = arith.mulf %38, %43 : vector<16x128xf32>
    %c0_24 = arith.constant 0 : index
    %c0_25 = arith.constant 0 : index
    %45 = vector.load %arg9[%c0_24, %c0_25] : memref<128x32xf32, #tpu.memory_space<vmem>>, vector<128x32xf32>
    %cst_26 = arith.constant dense<0.000000e+00> : vector<16x32xf32>
    %46 = tpu.matmul %44, %45, %cst_26 {dimension_numbers = #tpu.dot_dimension_numbers<[1], [0], [0], [1], [0, 0, 1, 1], [], []>} : vector<16x128xf32>, vector<128x32xf32>, vector<16x32xf32> -> vector<16x32xf32>
    %c0_27 = arith.constant 0 : index
    %c0_28 = arith.constant 0 : index
    %47 = vector.load %arg10[%c0_27, %c0_28] : memref<1x32xf32, #tpu.memory_space<vmem>>, vector<1x32xf32>
    %48 = vector.broadcast %47 : vector<1x32xf32> to vector<16x32xf32>
    %49 = arith.addf %46, %48 : vector<16x32xf32>
    %50 = arith.addf %7, %49 : vector<16x32xf32>
    %c0_29 = arith.constant 0 : index
    %c0_30 = arith.constant 0 : index
    %51 = vector.load %arg11[%c0_29, %c0_30] : memref<16x32xf32, #tpu.memory_space<vmem>>, vector<16x32xf32>
    tpu.vector_store %arg11[%c0_29, %c0_30], %50 {strides = array<i32>} : memref<16x32xf32, #tpu.memory_space<vmem>>, vector<16x32xf32>,
    return
  }
  func.func @transform_0(%arg0: i32) -> (i32, i32) {
    %c0_i32 = arith.constant 0 : i32
    %c0_i32_0 = arith.constant 0 : i32
    return %arg0, %c0_i32 : i32, i32
  }
  func.func @transform_1(%arg0: i32) -> (i32, i32) {
    %c0_i32 = arith.constant 0 : i32
    %c0_i32_0 = arith.constant 0 : i32
    return %arg0, %c0_i32 : i32, i32
  }
  func.func @transform_2(%arg0: i32) -> (i32, i32) {
    %c0_i32 = arith.constant 0 : i32
    %c0_i32_0 = arith.constant 0 : i32
    %c0_i32_1 = arith.constant 0 : i32
    return %c0_i32, %c0_i32_0 : i32, i32
  }
  func.func @transform_3(%arg0: i32) -> (i32, i32) {
    %c0_i32 = arith.constant 0 : i32
    %c0_i32_0 = arith.constant 0 : i32
    %c0_i32_1 = arith.constant 0 : i32
    return %c0_i32, %c0_i32_0 : i32, i32
  }
  func.func @transform_4(%arg0: i32) -> (i32, i32) {
    %c0_i32 = arith.constant 0 : i32
    %c0_i32_0 = arith.constant 0 : i32
    %c0_i32_1 = arith.constant 0 : i32
    return %c0_i32, %c0_i32_0 : i32, i32
  }
  func.func @transform_5(%arg0: i32) -> (i32, i32) {
    %c0_i32 = arith.constant 0 : i32
    %c0_i32_0 = arith.constant 0 : i32
    %c0_i32_1 = arith.constant 0 : i32
    return %c0_i32, %c0_i32_0 : i32, i32
  }
  func.func @transform_6(%arg0: i32) -> (i32, i32) {
    %c0_i32 = arith.constant 0 : i32
    %c0_i32_0 = arith.constant 0 : i32
    %c0_i32_1 = arith.constant 0 : i32
    return %c0_i32, %c0_i32_0 : i32, i32
  }
  func.func @transform_7(%arg0: i32) -> (i32, i32) {
    %c0_i32 = arith.constant 0 : i32
    %c0_i32_0 = arith.constant 0 : i32
    %c0_i32_1 = arith.constant 0 : i32
    return %c0_i32, %c0_i32_0 : i32, i32
  }
  func.func @transform_8(%arg0: i32) -> (i32, i32) {
    %c0_i32 = arith.constant 0 : i32
    %c0_i32_0 = arith.constant 0 : i32
    %c0_i32_1 = arith.constant 0 : i32
    return %c0_i32, %c0_i32_0 : i32, i32
  }
  func.func @transform_9(%arg0: i32) -> (i32, i32) {
    %c0_i32 = arith.constant 0 : i32
    %c0_i32_0 = arith.constant 0 : i32
    %c0_i32_1 = arith.constant 0 : i32
    return %c0_i32, %c0_i32_0 : i32, i32
  }
  func.func @transform_10(%arg0: i32) -> (i32, i32) {
    %c0_i32 = arith.constant 0 : i32
    %c0_i32_0 = arith.constant 0 : i32
    return %arg0, %c0_i32 : i32, i32
  }
}

</mosaic_0001>

<bundles_post_ra>
// kernel: transformer_block.3
= control target key start
LH: loop header
LB: loop body
LE: loop exit
PB: predicated region body
PF: predicated region fallthrough
CT: control target
= control target key end

     0   :  { %s657_s0 = inlined_call_operand.vmem [shape: f32[16,32], index: 0, kind: input, shape index: {}]   ;;  %s658_s1 = inlined_call_operand.vmem [shape: f32[16,32], index: 1, kind: input, shape index: {}]   ;;  %s659_s2 = inlined_call_operand.vmem [shape: f32[32,32], index: 2, kind: input, shape index: {}]   ;;  %s660_s3 = inlined_call_operand.vmem [shape: f32[1,32], index: 3, kind: input, shape index: {}]   ;;  %s661_s4 = inlined_call_operand.vmem [shape: f32[1,32], index: 4, kind: input, shape index: {}]   ;;  %s662_s5 = inlined_call_operand.vmem [shape: f32[1,32], index: 5, kind: input, shape index: {}]   ;;  %s663_s6 = inlined_call_operand.vmem [shape: f32[32,128], index: 6, kind: input, shape index: {}]   ;;  %s664_s7 = inlined_call_operand.vmem [shape: f32[1,128], index: 7, kind: input, shape index: {}]   ;;  %s665_s8 = inlined_call_operand.vmem [shape: f32[128,32], index: 8, kind: input, shape index: {}]   ;;  %s666_s9 = inlined_call_operand.vmem [shape: f32[1,32], index: 9, kind: input, shape index: {}]   ;;  %s667_s10 = inlined_call_operand.hbm [shape: f32[16,32], index: 10, kind: output, shape index: {}]  }
   0x1   :  { %v43_v0 = vld [vmem:[%s659_s2 + $0x18] sm:$0xff]  ;;  %v42_v1 = vld [vmem:[%s659_s2 + $0x10] sm:$0xff]  ;;  %v41_v2 = vld [vmem:[%s659_s2 + $0x8] sm:$0xff] }
   0x2   :  { %67 = vmatpush.msra.mxu0 %v43_v0  ;;  %v40_v3 = vld [vmem:[%s659_s2] sm:$0xff] }
   0x4   :  { %68 = vmatpush.msra.mxu0 %v42_v1 }
   0x5   :  { %15 = vsyncpa [#allocation3], 0  ;;  %v38_v4 = vld [vmem:[%s658_s1] sm:$0xff]  ;;  %vm48_vm0 = vcmask 261120   ;;  %v39_v5 = vld [vmem:[%s658_s1 + $0x8] sm:$0xff]  ;;  %v436_v17 = vmov 32.0  }
   0x6   :  { %69 = vmatpush.msra.mxu0 %v41_v2  ;;  %v391_v6 = vld [vmem:[%s660_s3] ss:$0 sm:$0xff]  ;;  %v37_v12 = vld [vmem:[%s657_s0 + $0x8] sm:$0xff]  ;;  %396 = vrcp.f32 %v436_v17  ;;  %v178_v34 = vld [vmem:[%s663_s6 + $0x18] sm:$0xff]  ;;  %s437_s23 = smov [#allocation2]   ;;  %s353_s2 = sshll.u32 %s667_s10, 4  ;;  %s354_s2 = int_to_ptr.hbm [resolvable:$true] %s353_s2 }
   0x7   :  { %v36_v7 = vld [vmem:[%s657_s0] sm:$0xff]  ;;  %v177_v35 = vld [vmem:[%s663_s6 + $0x10] sm:$0xff]  ;;  %201 = vmatpush.msra.mxu1 %v178_v34  ;;  %v176_v36 = vld [vmem:[%s663_s6 + $0x8] sm:$0xff]  ;;  %s351_s24 = sshll.u32 %s437_s23, 4  ;;  %s439_s27 = smov 8   ;;  %s352_s24 = int_to_ptr.vmem [resolvable:$true] %s351_s24 }
   0x8   :  { %70 = vmatpush.msra.mxu0 %v40_v3  ;;  %v175_v37 = vld [vmem:[%s663_s6] sm:$0xff] }
   0x9   :  { %365 = vmatmul.msk.f32.vlgmr.msra.gmra.mxu0 %vm48_vm0, %v38_v4  ;;  %202 = vmatpush.msra.mxu1 %v177_v35  ;;  %v312_v34 = vld [vmem:[%s665_s8 + $0x60] sm:$0xff]  ;;  %v311_v35 = vld [vmem:[%s665_s8 + $0x58] sm:$0xff] }
   0xb   :  { %203 = vmatpush.msra.mxu1 %v176_v36 }
   0xc   :  { %v397_v18 = vpop.eup %396 }
   0xd   :  { %v89_v19 = vmul.f32 32.0, %v397_v18  ;;  %vm93_vm1 = vweird.f32 %v397_v18  ;;  %204 = vmatpush.msra.mxu1 %v175_v37 }
   0xf   :  { %v90_v20 = vsub.f32 1.0, %v89_v19 }
  0x11   :  { %366 = vmatmul.msk.f32.gmra.mxu0 %vm48_vm0, %v39_v5  ;;  %v91_v21 = vmul.f32 %v397_v18, %v90_v20 }
  0x13   :  { %v92_v22 = vadd.f32 %v397_v18, %v91_v21 }
  0x15   :  { %v94_v23 = vsel %vm93_vm1, %v397_v18, %v92_v22 }
  0x86   :  { %v72_v8 = vpop.f32.mrf.mxu0 }
  0x87   :  { %v73_v9 = vadd.f32 %v391_v6, %v72_v8 }
  0x89   :  { %v521_v10 = vadd.f32 %v73_v9, %v36_v7 }
  0x8b   :  { %v82_v11 = vsel %vm48_vm0, %v521_v10, 0.0 }
  0x8c   :  { %83 = vadd.xlane.f32.xlu0 %v82_v11  ;;  %v392_v11 = vld [vmem:[%s661_s4] ss:$0 sm:$0xff] }
  0x8e   :  { %v75_v13 = vpop.f32.mrf.mxu0 }
  0x8f   :  { %v76_v14 = vadd.f32 %v391_v6, %v75_v13 }
  0x91   :  { %v528_v15 = vadd.f32 %v76_v14, %v37_v12 }
  0x93   :  { %v85_v16 = vsel %vm48_vm0, %v528_v15, 0.0 }
  0x94   :  { %86 = vadd.xlane.f32.xlu0 %v85_v16  ;;  %v393_v16 = vld [vmem:[%s662_s5] ss:$0 sm:$0xff] }
  0xff   :  { %v84_v24 = vpop.xlane.xlu0 %83 }
 0x100   :  { %v95_v25 = vmul.f32 %v94_v23, %v84_v24 }
 0x102   :  { %v533_v26 = vsub.f32 %v521_v10, %v95_v25 }
 0x104   :  { %v99_v27 = vmul.f32 %v533_v26, %v533_v26 }
 0x106   :  { %v101_v28 = vsel %vm48_vm0, %v99_v27, 0.0 }
 0x107   :  { %102 = vadd.xlane.f32.xlu1 %v101_v28  ;;  %v87_v29 = vpop.xlane.xlu0 %86 }
 0x108   :  { %v96_v30 = vmul.f32 %v94_v23, %v87_v29 }
 0x10a   :  { %v539_v31 = vsub.f32 %v528_v15, %v96_v30  ;;  %v315_v30 = vld [vmem:[%s665_s8 + $0x78] sm:$0xff] }
 0x10b   :  { %320 = vmatpush.msra.mxu2 %v315_v30  ;;  %371 = vmatpush.msra.mxu3 %v315_v30 }
 0x10c   :  { %v100_v32 = vmul.f32 %v539_v31, %v539_v31 }
 0x10e   :  { %v104_v33 = vsel %vm48_vm0, %v100_v32, 0.0  ;;  %v314_v32 = vld [vmem:[%s665_s8 + $0x70] sm:$0xff] }
 0x10f   :  { %105 = vadd.xlane.f32.xlu1 %v104_v33  ;;  %321 = vmatpush.msra.mxu2 %v314_v32  ;;  %v394_v33 = vld [vmem:[%s664_s7] ss:$0 sm:$0xff] }
 0x110   :  { %372 = vmatpush.msra.mxu3 %v314_v32 }
 0x17a   :  { %v103_v38 = vpop.xlane.xlu1 %102 }
 0x17b   :  { %v107_v39 = vmul.f32 %v103_v38, %v94_v23  ;;  %v310_v38 = vld [vmem:[%s665_s8 + $0x50] sm:$0xff] }
 0x17d   :  { %v109_v40 = vadd.f32 1e-05, %v107_v39 }
 0x17f   :  { %398 = vrsqrt.f32 %v109_v40  ;;  %vm118_vm2 = vcmp.eq.f32.partialorder %v109_v40, inf  ;;  %v121_v54 = vand.u32 2147483648, %v109_v40  ;;  %vm120_vm3 = vcmp.eq.f32.partialorder %v109_v40, 0.0 }
 0x182   :  { %v106_v41 = vpop.xlane.xlu1 %105 }
 0x183   :  { %v108_v42 = vmul.f32 %v106_v41, %v94_v23 }
 0x185   :  { %v399_v43 = vpop.eup %398  ;;  %v110_v44 = vadd.f32 1e-05, %v108_v42  ;;  %v308_v42 = vld [vmem:[%s665_s8 + $0x40] sm:$0xff] }
 0x186   :  { %v112_v45 = vmul.f32 %v399_v43, %v109_v40 }
 0x187   :  { %400 = vrsqrt.f32 %v110_v44  ;;  %vm130_vm4 = vcmp.eq.f32.partialorder %v110_v44, inf  ;;  %v133_v61 = vand.u32 2147483648, %v110_v44  ;;  %vm132_vm5 = vcmp.eq.f32.partialorder %v110_v44, 0.0 }
 0x188   :  { %v113_v46 = vmul.f32 %v399_v43, %v112_v45  ;;  %v306_v45 = vld [vmem:[%s665_s8 + $0x30] sm:$0xff] }
 0x18a   :  { %v114_v47 = vmul.f32 0.5, %v113_v46 }
 0x18c   :  { %v115_v48 = vsub.f32 1.5, %v114_v47 }
 0x18d   :  { %v401_v49 = vpop.eup %400 }
 0x18e   :  { %v124_v50 = vmul.f32 %v401_v49, %v110_v44  ;;  %v116_v51 = vmul.f32 %v399_v43, %v115_v48  ;;  %v307_v43 = vld [vmem:[%s665_s8 + $0x38] sm:$0xff] }
 0x190   :  { %v125_v52 = vmul.f32 %v401_v49, %v124_v50  ;;  %v117_v53 = vmul.f32 %v116_v51, %v109_v40 }
 0x192   :  { %v126_v55 = vmul.f32 0.5, %v125_v52  ;;  %v119_v56 = vsel %vm118_vm2, %v109_v40, %v117_v53  ;;  %v309_v40 = vld [vmem:[%s665_s8 + $0x48] sm:$0xff]  ;;  %v304_v53 = vld [vmem:[%s665_s8 + $0x20] sm:$0xff] }
 0x193   :  { %v122_v57 = vsel %vm120_vm3, %v121_v54, %v119_v56 }
 0x194   :  { %v127_v58 = vsub.f32 1.5, %v126_v55  ;;  %402 = vrcp.f32 %v122_v57  ;;  %v146_v3 = vand.u32 2147483648, %v122_v57  ;;  %v144_v5 = vand.u32 2147483647, %v122_v57 }
 0x195   :  { %vm140_vm7 = vweird.f32 %v122_v57 }
 0x196   :  { %v128_v59 = vmul.f32 %v401_v49, %v127_v58  ;;  %v147_v8 = vor.u32 1.1754944e-38, %v146_v3  ;;  %vm145_vm9 = vcmp.eq.f32.partialorder %v144_v5, 8.507059e+37  ;;  %v305_v49 = vld [vmem:[%s665_s8 + $0x28] sm:$0xff] }
 0x198   :  { %v129_v60 = vmul.f32 %v128_v59, %v110_v44 }
 0x19a   :  { %v403_v62 = vpop.eup %402  ;;  %v131_v63 = vsel %vm130_vm4, %v110_v44, %v129_v60  ;;  %v302_v60 = vld [vmem:[%s665_s8 + $0x10] sm:$0xff] }
 0x19b   :  { %v136_v0 = vmul.f32 %v403_v62, %v122_v57  ;;  %v134_v1 = vsel %vm132_vm5, %v133_v61, %v131_v63  ;;  %vm141_vm6 = vweird.f32 %v403_v62  ;;  %v303_v57 = vld [vmem:[%s665_s8 + $0x18] sm:$0xff]  ;;  %v301_v61 = vld [vmem:[%s665_s8 + $0x8] sm:$0xff] }
 0x19c   :  { %404 = vrcp.f32 %v134_v1  ;;  %vm142_vm8 = vmor %vm140_vm7, %vm141_vm6  ;;  %v161_v18 = vand.u32 2147483648, %v134_v1  ;;  %v159_v21 = vand.u32 2147483647, %v134_v1  ;;  %vm155_vm11 = vweird.f32 %v134_v1 }
 0x19d   :  { %v137_v2 = vsub.f32 1.0, %v136_v0 }
 0x19e   :  { %v162_v24 = vor.u32 1.1754944e-38, %v161_v18  ;;  %vm160_vm13 = vcmp.eq.f32.partialorder %v159_v21, 8.507059e+37 }
 0x19f   :  { %v138_v4 = vmul.f32 %v403_v62, %v137_v2 }
 0x1a1   :  { %v139_v6 = vadd.f32 %v403_v62, %v138_v4  ;;  %v300_v4 = vld [vmem:[%s665_s8] sm:$0xff] }
 0x1a2   :  { %v405_v7 = vpop.eup %404 }
 0x1a3   :  { %v143_v9 = vsel %vm142_vm8, %v403_v62, %v139_v6  ;;  %v151_v12 = vmul.f32 %v405_v7, %v134_v1  ;;  %vm156_vm10 = vweird.f32 %v405_v7 }
 0x1a4   :  { %v148_v13 = vsel %vm145_vm9, %v147_v8, %v143_v9  ;;  %vm157_vm12 = vmor %vm155_vm11, %vm156_vm10 }
 0x1a5   :  { %v149_v14 = vmul.f32 %v148_v13, %v533_v26  ;;  %v152_v17 = vsub.f32 1.0, %v151_v12 }
 0x1a7   :  { %v168_v19 = vmul.f32 %v392_v11, %v149_v14  ;;  %v153_v20 = vmul.f32 %v405_v7, %v152_v17 }
 0x1a9   :  { %v173_v22 = vadd.f32 %v393_v16, %v168_v19  ;;  %v154_v23 = vadd.f32 %v405_v7, %v153_v20 }
 0x1ab   :  { %367 = vmatmul.msk.f32.vlgmr.msra.gmra.mxu1 %vm48_vm0, %v173_v22  ;;  %v158_v25 = vsel %vm157_vm12, %v405_v7, %v154_v23 }
 0x1ac   :  { %v163_v26 = vsel %vm160_vm13, %v162_v24, %v158_v25 }
 0x1ad   :  { %v164_v27 = vmul.f32 %v163_v26, %v539_v31  ;;  %v313_v31 = vld [vmem:[%s665_s8 + $0x68] sm:$0xff] }
 0x1ae   :  { %322 = vmatpush.msra.mxu2 %v313_v31  ;;  %373 = vmatpush.msra.mxu3 %v313_v31 }
 0x1af   :  { %v169_v28 = vmul.f32 %v392_v11, %v164_v27 }
 0x1b0   :  { %323 = vmatpush.msra.mxu2 %v312_v34  ;;  %374 = vmatpush.msra.mxu3 %v312_v34 }
 0x1b1   :  { %v174_v29 = vadd.f32 %v393_v16, %v169_v28 }
 0x1b2   :  { %324 = vmatpush.msra.mxu2 %v311_v35  ;;  %375 = vmatpush.msra.mxu3 %v311_v35 }
 0x1b3   :  { %368 = vmatmul.msk.f32.gmra.mxu1 %vm48_vm0, %v174_v29 }
 0x1b4   :  { %325 = vmatpush.msra.mxu2 %v310_v38  ;;  %376 = vmatpush.msra.mxu3 %v310_v38 }
 0x1b6   :  { %326 = vmatpush.msra.mxu2 %v309_v40  ;;  %377 = vmatpush.msra.mxu3 %v309_v40 }
 0x1b8   :  { %327 = vmatpush.msra.mxu2 %v308_v42  ;;  %378 = vmatpush.msra.mxu3 %v308_v42 }
 0x1ba   :  { %328 = vmatpush.msra.mxu2 %v307_v43  ;;  %379 = vmatpush.msra.mxu3 %v307_v43 }
 0x1bc   :  { %329 = vmatpush.msra.mxu2 %v306_v45  ;;  %380 = vmatpush.msra.mxu3 %v306_v45 }
 0x1be   :  { %330 = vmatpush.msra.mxu2 %v305_v49  ;;  %381 = vmatpush.msra.mxu3 %v305_v49 }
 0x1c0   :  { %331 = vmatpush.msra.mxu2 %v304_v53  ;;  %382 = vmatpush.msra.mxu3 %v304_v53 }
 0x1c2   :  { %332 = vmatpush.msra.mxu2 %v303_v57  ;;  %383 = vmatpush.msra.mxu3 %v303_v57 }
 0x1c4   :  { %333 = vmatpush.msra.mxu2 %v302_v60  ;;  %384 = vmatpush.msra.mxu3 %v302_v60 }
 0x1c6   :  { %334 = vmatpush.msra.mxu2 %v301_v61  ;;  %385 = vmatpush.msra.mxu3 %v301_v61 }
 0x1c8   :  { %335 = vmatpush.msra.mxu2 %v300_v4  ;;  %386 = vmatpush.msra.mxu3 %v300_v4 }
 0x228   :  { %v206_v36 = vpop.f32.mrf.mxu1 }
 0x229   :  { %v584_v37 = vadd.f32 %v394_v33, %v206_v36 }
 0x22b   :  { %v590_v39 = vmul.f32 0.70710677, %v584_v37 }
 0x22d   :  { %v216_v41 = vmul.f32 %v590_v39, %v590_v39 }
 0x22f   :  { %v603_v44 = vmin.f32 %v216_v41, 16.0 }
 0x230   :  { %v209_v46 = vpop.f32.mrf.mxu1 }
 0x231   :  { %v218_v47 = vmul.f32 2.1237322e-06, %v603_v44  ;;  %v609_v48 = vadd.f32 %v394_v33, %v209_v46  ;;  %v229_v50 = vmul.f32 3.8918573e-05, %v603_v44 }
 0x233   :  { %v219_v51 = vadd.f32 0.00028619796, %v218_v47  ;;  %v616_v52 = vmul.f32 0.70710677, %v609_v48  ;;  %v230_v54 = vadd.f32 0.001143296, %v229_v50 }
 0x235   :  { %v220_v55 = vmul.f32 %v219_v51, %v603_v44  ;;  %v256_v56 = vmul.f32 %v616_v52, %v616_v52  ;;  %v231_v58 = vmul.f32 %v230_v54, %v603_v44 }
 0x237   :  { %v257_v59 = vmin.f32 %v256_v56, 16.0  ;;  %v232_v62 = vadd.f32 0.014752088, %v231_v58  ;;  %v221_v63 = vadd.f32 0.0036580483, %v220_v55 }
 0x239   :  { %v258_v0 = vmul.f32 2.1237322e-06, %v257_v59  ;;  %v269_v1 = vmul.f32 3.8918573e-05, %v257_v59  ;;  %v233_v2 = vmul.f32 %v232_v62, %v603_v44  ;;  %v222_v7 = vmul.f32 %v221_v63, %v603_v44 }
 0x23b   :  { %v259_v3 = vadd.f32 0.00028619796, %v258_v0  ;;  %v270_v5 = vadd.f32 0.001143296, %v269_v1  ;;  %v234_v6 = vadd.f32 0.112945676, %v233_v2 }
 0x23c   :  { %v223_v16 = vadd.f32 0.05243302, %v222_v7 }
 0x23d   :  { %v260_v8 = vmul.f32 %v259_v3, %v257_v59  ;;  %v271_v9 = vmul.f32 %v270_v5, %v257_v59  ;;  %v235_v11 = vmul.f32 %v234_v6, %v603_v44  ;;  %v213_v3 = vmul.f32 0.5, %v609_v48 }
 0x23e   :  { %v224_v22 = vmul.f32 %v223_v16, %v603_v44 }
 0x23f   :  { %v272_v12 = vadd.f32 0.014752088, %v271_v9  ;;  %v261_v13 = vadd.f32 0.0036580483, %v260_v8  ;;  %v236_v14 = vadd.f32 0.4994258, %v235_v11 }
 0x240   :  { %v225_v26 = vadd.f32 0.18741608, %v224_v22 }
 0x241   :  { %v273_v17 = vmul.f32 %v272_v12, %v257_v59  ;;  %v237_v18 = vmul.f32 %v236_v14, %v603_v44  ;;  %v262_v20 = vmul.f32 %v261_v13, %v257_v59 }
 0x242   :  { %v226_v32 = vmul.f32 %v225_v26, %v603_v44 }
 0x243   :  { %v274_v19 = vadd.f32 0.112945676, %v273_v17  ;;  %v238_v21 = vadd.f32 1.0, %v237_v18  ;;  %v263_v25 = vadd.f32 0.05243302, %v262_v20 }
 0x244   :  { %v227_v36 = vadd.f32 1.1283791, %v226_v32 }
 0x245   :  { %v275_v23 = vmul.f32 %v274_v19, %v257_v59  ;;  %406 = vrcp.f32 %v238_v21  ;;  %v264_v30 = vmul.f32 %v263_v25, %v257_v59  ;;  %v250_v35 = vand.u32 2147483648, %v238_v21 }
 0x246   :  { %v248_v40 = vand.u32 2147483647, %v238_v21  ;;  %vm244_vm15 = vweird.f32 %v238_v21  ;;  %v228_v47 = vmul.f32 %v227_v36, %v590_v39 }
 0x247   :  { %v276_v24 = vadd.f32 0.4994258, %v275_v23  ;;  %v265_v34 = vadd.f32 0.18741608, %v264_v30  ;;  %v251_v45 = vor.u32 1.1754944e-38, %v250_v35 }
 0x248   :  { %vm249_vm2 = vcmp.eq.f32.partialorder %v248_v40, 8.507059e+37 }
 0x249   :  { %v277_v27 = vmul.f32 %v276_v24, %v257_v59  ;;  %v266_v43 = vmul.f32 %v265_v34, %v257_v59  ;;  %v212_v59 = vmul.f32 0.5, %v584_v37  ;;  %v395_v37 = vld [vmem:[%s666_s9] ss:$0 sm:$0xff]  ;;  %s438_s9 = smov 128  }
 0x24b   :  { %v278_v28 = vadd.f32 1.0, %v277_v27  ;;  %v407_v29 = vpop.eup %406  ;;  %v267_v54 = vadd.f32 1.1283791, %v266_v43 }
 0x24c   :  { %v240_v31 = vmul.f32 %v407_v29, %v238_v21  ;;  %vm245_vm14 = vweird.f32 %v407_v29 }
 0x24d   :  { %408 = vrcp.f32 %v278_v28  ;;  %vm246_vm1 = vmor %vm244_vm15, %vm245_vm14  ;;  %v290_v53 = vand.u32 2147483648, %v278_v28  ;;  %v288_v56 = vand.u32 2147483647, %v278_v28  ;;  %vm284_vm4 = vweird.f32 %v278_v28 }
 0x24e   :  { %v241_v33 = vsub.f32 1.0, %v240_v31  ;;  %v268_v39 = vmul.f32 %v267_v54, %v616_v52 }
 0x24f   :  { %v291_v61 = vor.u32 1.1754944e-38, %v290_v53  ;;  %vm289_vm6 = vcmp.eq.f32.partialorder %v288_v56, 8.507059e+37 }
 0x250   :  { %v242_v38 = vmul.f32 %v407_v29, %v241_v33 }
 0x252   :  { %v243_v42 = vadd.f32 %v407_v29, %v242_v38 }
 0x253   :  { %v409_v41 = vpop.eup %408 }
 0x254   :  { %v280_v46 = vmul.f32 %v409_v41, %v278_v28  ;;  %v247_v49 = vsel %vm246_vm1, %v407_v29, %v243_v42  ;;  %vm285_vm3 = vweird.f32 %v409_v41 }
 0x255   :  { %v252_v44 = vsel %vm249_vm2, %v251_v45, %v247_v49  ;;  %vm286_vm5 = vmor %vm284_vm4, %vm285_vm3 }
 0x256   :  { %v281_v50 = vsub.f32 1.0, %v280_v46  ;;  %v253_v51 = vmul.f32 %v252_v44, %v228_v47 }
 0x258   :  { %v282_v55 = vmul.f32 %v409_v41, %v281_v50  ;;  %v369_v57 = vclamps-f32 %v253_v51, 1.0 }
 0x25a   :  { %v283_v58 = vadd.f32 %v409_v41, %v282_v55  ;;  %v296_v60 = vadd.f32 1.0, %v369_v57 }
 0x25c   :  { %v287_v62 = vsel %vm286_vm5, %v409_v41, %v283_v58  ;;  %v298_v63 = vmul.f32 %v296_v60, %v212_v59 }
 0x25d   :  { %v292_v0 = vsel %vm289_vm6, %v291_v61, %v287_v62 }
 0x25e   :  { %v293_v1 = vmul.f32 %v292_v0, %v268_v39  ;;  %336 = vmatmul.f32.vlgmr.msra.gmra.mxu2 %v298_v63 }
 0x260   :  { %v370_v2 = vclamps-f32 %v293_v1, 1.0 }
 0x262   :  { %v297_v4 = vadd.f32 1.0, %v370_v2 }
 0x264   :  { %v299_v5 = vmul.f32 %v297_v4, %v213_v3 }
 0x266   :  { %339 = vmatmul.f32.vlgmr.msra.gmra.mxu3 %v299_v5 }
 0x2e1   :  { %v337_v6 = vpop.f32.mrf.mxu2 }
 0x2e2   :  { %v338_v7 = vadd.f32 %v395_v37, %v337_v6 }
 0x2e4   :  { %v343_v52 = vadd.f32 %v338_v7, %v521_v10 }
 0x2e6   :  { %345 = vst.msk [vmem:[#allocation2] sm:$0xff] %vm48_vm0, %v343_v52 }
 0x2e9   :  { %v340_v48 = vpop.f32.mrf.mxu3 }
 0x2ea   :  { %v341_v8 = vadd.f32 %v395_v37, %v340_v48 }
 0x2ec   :  { %v344_v9 = vadd.f32 %v341_v8, %v528_v15 }
 0x2ee   :  { %346 = vst.msk [vmem:[#allocation2 + $0x8] sm:$0xff] %vm48_vm0, %v344_v9 }
 0x2ef   :  { %359 = dma.vmem_to_hbm [thread:$0]  %s352_s24, 256, %s354_s2, [#allocation3], %s438_s9, %s438_s9, %s439_s27  }
 0x2f0   :  { %434 = dma.done.wait [#allocation3], 256  }
 0x2f1   :  { %435 = vsyncadd [#allocation3], 4294967040 }
 0x2f2   :  { %364 = vsyncpa [#allocation3], 1 }

// kernel: transformer_block.2
= control target key start
LH: loop header
LB: loop body
LE: loop exit
PB: predicated region body
PF: predicated region fallthrough
CT: control target
= control target key end

     0   :  { %9 = vsyncpa [#allocation3], 0  ;;  %s855_s0 = inlined_call_operand.hbm [shape: f32[2,8,32], index: 0, kind: input, shape index: {}]   ;;  %s856_s1 = inlined_call_operand.vmem [shape: f32[1,32], index: 1, kind: input, shape index: {}]   ;;  %s857_s2 = inlined_call_operand.vmem [shape: f32[1,32], index: 2, kind: input, shape index: {}]   ;;  %s858_s3 = inlined_call_operand.hbm [shape: f32[32,96], index: 3, kind: input, shape index: {}]   ;;  %s859_s4 = inlined_call_operand.vmem [shape: f32[2,32,8], index: 4, kind: output, shape index: {}]  }
   0x1   :  { %11 = vsyncpa [#allocation3 + $0x1], 0 }
   0x2   :  { %12 = vsyncpa [#allocation5], 0  ;;  %s734_s15 = smov 0   ;;  %s736_s16 = smov 0  }
   0x3   :  { %s738_s17 = smov 0   ;;  %s740_s18 = smov 0  }
   0x4 LB: > { %s155_s21 = sshll.u32 %s858_s3, 4  ;;  %s756_s22 = sadd.s32 4294967295, %s701_s18   ;;  %s701_s18 = sphi %s740_s18, %s866_s18   ;;  %s697_s17 = sphi %s738_s17, %s865_s17   ;;  %s693_s16 = sphi %s736_s16, %s864_s16   ;;  %s689_s15 = sphi %s734_s15, %s863_s15   ;;  %s156_s21 = int_to_ptr.hbm [resolvable:$true] %s155_s21 }
   0x5   : > { %p518_p0 = scmp.ge.s32.totalorder %s701_s18, 1  ;;  %p39_p1 = scmp.eq.s32.totalorder %s756_s22, 0 }
   0x6   : > { %p138_p2 = scmp.lt.s32.totalorder %s701_s18, 3  ;;  %s703_s24 = smov [#allocation4]  }
   0x7   : > { %s157_s25 = sshll.u32 %s703_s24, 4  ;;  %s704_s26 = smov 128   ;;  %s158_s25 = int_to_ptr.vmem [resolvable:$true] %s157_s25 }
   0x8   : > { %p761_p3 = pnand %p518_p0, %p138_p2  ;;  %s705_s27 = smov 8  }
   0x9   : > { %s770_s28 = sadd.s32 1, %s701_s18   ;;  %s25_s30 = sadd.s32 1, %s697_s17 }
   0xa   : > { %p541_p4 = pneg %p761_p3  ;;  %s22_s29 = ssub.s32 %s701_s18, %s770_s28 }
   0xb   : > { %p23_p6 = scmp.eq.s32.totalorder %s22_s29, 0  ;;  %p32_p7 = scmp.ne.s32.totalorder %s697_s17, %s693_s16 }
   0xc   : > { %p542_p5 = pnand %p541_p4, %p39_p1  ;;  %p33_p8 = scmp.eq.s32.totalorder %s701_s18, 0 }
   0xd   : > { %p38_p9 = scmp.ne.s32.totalorder %s693_s16, %s689_s15  ;;  %p550_p12 = scmp.lt.s32.totalorder %s701_s18, 2 }
   0xe   : > { %544 = dma.hbm_to_vmem [thread:$0]  (!%p542_p5), %s156_s21, 512, %s158_s25, [#allocation5], %s704_s26, %s704_s26, %s705_s27  }
   0xf   : > { %s780_s5 = scalar_select %p23_p6, %s697_s17, %s25_s30  }
  0x10   : > { %p34_p10 = por %p33_p8, %p32_p7  ;;  %p784_p11 = por %p39_p1, %p38_p9 }
  0x11   : > { %s171_s7 = sand.u32 1, %s697_s17   ;;  %s522_s9 = sshll.u32 %s701_s18, 3 }
  0x12   : > { %s521_s8 = sshll.u32 %s171_s7, 3  ;;  %s179_s12 = scalar_lea.hbm %s855_s0, %s522_s9 }
  0x13   : > { %s175_s13 = scalar_lea.vmem [#allocation2], %s521_s8  ;;  %s181_s19 = sshll.u32 %s179_s12, 4  ;;  %s182_s19 = int_to_ptr.hbm [resolvable:$true] %s181_s19 }
  0x14   : > { %s183_s14 = sshll.u32 %s175_s13, 4  ;;  %p794_p13 = pnand %p550_p12, %p34_p10  ;;  %s184_s14 = int_to_ptr.vmem [resolvable:$true] %s183_s14 }
  0x15   : > { %s172_s20 = scalar_lea.sflag [#allocation3], %s171_s7  ;;  %s633_s21 = sshra.s32 %s182_s19, 4  ;;  %s634_s21 = int_to_ptr.hbm [resolvable:$true] %s633_s21 }
  0x16   : > { %s635_s24 = scalar_lea.hbm %s634_s21, 8  ;;  %p637_p2 = pneg %p794_p13 }
  0x17   : > { %p636_p0 = scmp.ne.s32.totalorder %s634_s21, %s635_s24  ;;  %s640_s26 = scalar_lea.hbm %s855_s0, 16 }
  0x18   : > { %p641_p6 = scmp.lt.s32.totalorder %s634_s21, %s855_s0  ;;  %p642_p7 = scmp.lt.s32.totalorder %s640_s26, %s635_s24 }
  0x19   : > { %p638_p4 = pnand %p637_p2, %p636_p0 }
  0x1a   : > { %p643_p8 = por %p642_p7, %p641_p6 }
  0x1b   : > { %p639_p5 = pneg %p638_p4 }
  0x1d   : > { %p644_p9 = pnand %p643_p8, %p639_p5 }
  0x1f   : > { %647 = shalt.err (!%p644_p9)
}
  0x20   : > { %548 = dma.hbm_to_vmem [thread:$0]  (!%p794_p13), %s182_s19, 128, %s184_s14, %s172_s20  }
  0x21   : > { %192 = sbr.rel (%p761_p3) target bundleno = 1155 (0x483), region = 36  ;;  %s194_s30 = sand.u32 (!%p761_p3), 1, %s693_s16  }
  0x22   : > { %s524_s7 = sshll.u32 (!%p761_p3), %s194_s30, 3  ;;  %s195_s8 = scalar_lea.sflag (!%p761_p3), [#allocation3], %s194_s30 }
  0x23   : > { %s198_s9 = scalar_lea.vmem (!%p761_p3), [#allocation2], %s524_s7 }
  0x26   : > { %680 = dma.done.wait (%p784_p11), %s195_s8, 128  }
  0x27   : > { %682 = vsyncadd (%p784_p11), %s195_s8, 4294967168 }
  0x28   : > { %684 = dma.done.wait (%p39_p1), [#allocation5], 512  }
  0x29   : > { %686 = vsyncadd (%p39_p1), [#allocation5], 4294966784  ;;  %vm237_vm0 = vcmask 261120   ;;  %v234_v0 = vld [vmem:[%s198_s9] sm:$0xff]  ;;  %v706_v2 = vmov 32.0   ;;  %v292_v16 = vld [vmem:[#allocation4 + $0x8] sm:$0xff]  ;;  %v347_v50 = vlaneseq }
  0x2a   : > { %v238_v1 = vsel %vm237_vm0, %v234_v0, 0.0  ;;  %593 = vrcp.f32 %v706_v2  ;;  %v294_v14 = vld [vmem:[#allocation4 + $0x18] sm:$0xff]  ;;  %v293_v15 = vld [vmem:[#allocation4 + $0x10] sm:$0xff]  ;;  %v291_v17 = vld [vmem:[#allocation4] sm:$0xff]  ;;  %s707_s12 = smov 64   ;;  %s708_s13 = smov 96  }
  0x2b   : > { %239 = vadd.xlane.f32.xlu0 %v238_v1  ;;  %310 = vmatpush.msra.mxu0 %v294_v14  ;;  %v591_v40 = vld [vmem:[%s856_s1] ss:$0 sm:$0xff]  ;;  %v348_v51 = vshrl.u32 %v347_v50, 7  ;;  %v350_v52 = vand.u32 127, %v347_v50  ;;  %vm353_vm9 = vcmask 64512   ;;  %p229_p1 = scmp.lt.s32.totalorder %s756_s22, 1 }
  0x2c   : > { %v592_v43 = vld [vmem:[%s857_s2] ss:$0 sm:$0xff] }
  0x2d   : > { %311 = vmatpush.msra.mxu0 %v293_v15  ;;  %vm351_vm8 = vcmp.gt.s32.totalorder %v350_v52, %v348_v51  ;;  %s868_s22 = smov (!%p229_p1, %s756_s22), 1 }
  0x2e   : > { %s534_s14 = sshll.u32 %s868_s22, 5 }
  0x2f   : > { %312 = vmatpush.msra.mxu0 %v292_v16  ;;  %s233_s20 = scalar_lea.vmem %s859_s4, %s534_s14 }
  0x30   : > { %v594_v3 = vpop.eup %593 }
  0x31   : > { %v242_v4 = vmul.f32 32.0, %v594_v3  ;;  %vm246_vm1 = vweird.f32 %v594_v3  ;;  %313 = vmatpush.msra.mxu0 %v291_v17 }
  0x33   : > { %v243_v5 = vsub.f32 1.0, %v242_v4 }
  0x35   : > { %v244_v6 = vmul.f32 %v594_v3, %v243_v5 }
  0x37   : > { %v245_v7 = vadd.f32 %v594_v3, %v244_v6 }
  0x39   : > { %v247_v8 = vsel %vm246_vm1, %v594_v3, %v245_v7 }
  0x9e   : > { %v240_v9 = vpop.xlane.xlu0 %239 }
  0x9f   : > { %v248_v10 = vmul.f32 %v247_v8, %v240_v9 }
  0xa1   : > { %v249_v11 = vsub.f32 %v234_v0, %v248_v10 }
  0xa3   : > { %v250_v12 = vmul.f32 %v249_v11, %v249_v11 }
  0xa5   : > { %v251_v13 = vsel %vm237_vm0, %v250_v12, 0.0 }
  0xa6   : > { %252 = vadd.xlane.f32.xlu0 %v251_v13 }
 0x119   : > { %v253_v18 = vpop.xlane.xlu0 %252 }
 0x11a   : > { %v254_v19 = vmul.f32 %v253_v18, %v247_v8 }
 0x11c   : > { %v255_v20 = vadd.f32 1e-05, %v254_v19 }
 0x11e   : > { %595 = vrsqrt.f32 %v255_v20  ;;  %vm263_vm2 = vcmp.eq.f32.partialorder %v255_v20, inf  ;;  %v266_v28 = vand.u32 2147483648, %v255_v20  ;;  %vm265_vm3 = vcmp.eq.f32.partialorder %v255_v20, 0.0 }
 0x124   : > { %v596_v21 = vpop.eup %595 }
 0x125   : > { %v257_v22 = vmul.f32 %v596_v21, %v255_v20 }
 0x127   : > { %v258_v23 = vmul.f32 %v596_v21, %v257_v22 }
 0x129   : > { %v259_v24 = vmul.f32 0.5, %v258_v23 }
 0x12b   : > { %v260_v25 = vsub.f32 1.5, %v259_v24 }
 0x12d   : > { %v261_v26 = vmul.f32 %v596_v21, %v260_v25 }
 0x12f   : > { %v262_v27 = vmul.f32 %v261_v26, %v255_v20 }
 0x131   : > { %v264_v29 = vsel %vm263_vm2, %v255_v20, %v262_v27 }
 0x132   : > { %v267_v30 = vsel %vm265_vm3, %v266_v28, %v264_v29 }
 0x133   : > { %597 = vrcp.f32 %v267_v30  ;;  %v279_v34 = vand.u32 2147483648, %v267_v30  ;;  %v277_v36 = vand.u32 2147483647, %v267_v30  ;;  %vm273_vm5 = vweird.f32 %v267_v30 }
 0x135   : > { %v280_v38 = vor.u32 1.1754944e-38, %v279_v34  ;;  %vm278_vm7 = vcmp.eq.f32.partialorder %v277_v36, 8.507059e+37 }
 0x139   : > { %v598_v31 = vpop.eup %597 }
 0x13a   : > { %v269_v32 = vmul.f32 %v598_v31, %v267_v30  ;;  %vm274_vm4 = vweird.f32 %v598_v31 }
 0x13b   : > { %vm275_vm6 = vmor %vm273_vm5, %vm274_vm4 }
 0x13c   : > { %v270_v33 = vsub.f32 1.0, %v269_v32 }
 0x13e   : > { %v271_v35 = vmul.f32 %v598_v31, %v270_v33 }
 0x140   : > { %v272_v37 = vadd.f32 %v598_v31, %v271_v35 }
 0x142   : > { %v276_v39 = vsel %vm275_vm6, %v598_v31, %v272_v37 }
 0x143   : > { %v281_v41 = vsel %vm278_vm7, %v280_v38, %v276_v39 }
 0x144   : > { %v282_v42 = vmul.f32 %v281_v41, %v249_v11 }
 0x146   : > { %v286_v44 = vmul.f32 %v591_v40, %v282_v42 }
 0x148   : > { %v290_v45 = vadd.f32 %v592_v43, %v286_v44 }
 0x14a   : > { %528 = vmatmul.msk.f32.vlgmr.msra.gmra.mxu0 %vm237_vm0, %v290_v45 }
 0x1c7   : > { %v315_v46 = vpop.f32.mrf.mxu0 }
 0x1c8   : > { %363 = vrot.lane.b32.xlu2 %v315_v46, %s707_s12  ;;  %320 = vrot.lane.b32.xlu1 %v315_v46, %s708_s13  ;;  %v318_v49 = vmul.f32 0.17677669, %v315_v46 }
 0x222   : > { %v364_v47 = vpop.permute.xlu2 %363 }
 0x223   : > { %384 = vmatpush.msra.mxu2 %v364_v47 }
 0x23a   : > { %v321_v48 = vpop.permute.xlu1 %320 }
 0x23b   : > { %529 = vmatpush.xpose.msk.msra.mxu1 %vm237_vm0, %v321_v48 }
 0x23e   : > { %530 = vmatmul.msk.f32.vlgmr.msra.gmra.mxu1 %vm237_vm0, %v318_v49 }
 0x2bb   : > { %v344_v53 = vpop.f32.mrf.mxu1 }
 0x2bc   : > { %v352_v54 = vsel %vm351_vm8, -1e+30, %v344_v53 }
 0x2bd   : > { %v354_v55 = vsel %vm353_vm9, %v352_v54, -inf }
 0x2be   : > { %355 = vmax.xlane.f32.xlu1 %v354_v55 }
 0x331   : > { %v356_v56 = vpop.xlane.xlu1 %355 }
 0x332   : > { %v357_v57 = vsub.f32 %v352_v54, %v356_v56 }
 0x334   : > { %v358_v58 = vmul.f32 1.442695, %v357_v57 }
 0x336   : > { %599 = vpow2.f32 %v358_v58 }
 0x33c   : > { %v600_v59 = vpop.eup %599 }
 0x33d   : > { %531 = vmatmul.msk.f32.vlgmr.msra.gmra.mxu2 %vm353_vm9, %v600_v59  ;;  %v360_v60 = vsel %vm353_vm9, %v600_v59, 0.0 }
 0x33e   : > { %361 = vadd.xlane.f32.xlu2 %v360_v60 }
 0x3b1   : > { %v362_v61 = vpop.xlane.xlu2 %361 }
 0x3b2   : > { %601 = vrcp.f32 %v362_v61  ;;  %v400_v1 = vand.u32 2147483648, %v362_v61  ;;  %v398_v3 = vand.u32 2147483647, %v362_v61  ;;  %vm394_vm11 = vweird.f32 %v362_v61 }
 0x3b4   : > { %v401_v5 = vor.u32 1.1754944e-38, %v400_v1  ;;  %vm399_vm13 = vcmp.eq.f32.partialorder %v398_v3, 8.507059e+37 }
 0x3b8   : > { %v602_v62 = vpop.eup %601 }
 0x3b9   : > { %v390_v63 = vmul.f32 %v602_v62, %v362_v61  ;;  %vm395_vm10 = vweird.f32 %v602_v62 }
 0x3ba   : > { %vm396_vm12 = vmor %vm394_vm11, %vm395_vm10 }
 0x3bb   : > { %v391_v0 = vsub.f32 1.0, %v390_v63 }
 0x3bd   : > { %v392_v2 = vmul.f32 %v602_v62, %v391_v0 }
 0x3bf   : > { %v393_v4 = vadd.f32 %v602_v62, %v392_v2 }
 0x3c0   : > { %v386_v7 = vpop.f32.mrf.mxu2 }
 0x3c1   : > { %v397_v6 = vsel %vm396_vm12, %v602_v62, %v393_v4 }
 0x3c2   : > { %v402_v8 = vsel %vm399_vm13, %v401_v5, %v397_v6 }
 0x3c3   : > { %v403_v9 = vmul.f32 %v402_v8, %v386_v7 }
 0x3c5   : > { %404 = vxpose.xlu0.b32.start.end [1/1] (short) (narrow) %v403_v9, 32 }
 0x469   : > { %v420_v10 = vpop.trf.xlu0 }
 0x46a   : > { %436 = vst.msk [vmem:[%s233_s20] sm:$0xff] %vm353_vm9, %v420_v10 }
 0x471   : > { %v421_v11 = vpop.trf.xlu0 }
 0x472   : > { %437 = vst.msk [vmem:[%s233_s20 + $0x8] sm:$0xff] %vm353_vm9, %v421_v11 }
 0x479   : > { %v422_v12 = vpop.trf.xlu0 }
 0x47a   : > { %438 = vst.msk [vmem:[%s233_s20 + $0x10] sm:$0xff] %vm353_vm9, %v422_v12 }
 0x481   : > { %v423_v13 = vpop.trf.xlu0 }
 0x482   : > { %439 = vst.msk [vmem:[%s233_s20 + $0x18] sm:$0xff] %vm353_vm9, %v423_v13 }
 0x483 PF: > { %p15_p3 = scmp.ge.s32.totalorder %s770_s28, 4   ;;  %s863_s15 = smov %s693_s16 }
 0x484   : > { %s864_s16 = smov %s697_s17  ;;  %s865_s17 = smov %s780_s5 }
 0x485   : > { %s866_s18 = smov %s770_s28  ;;  %17 = sbr.rel (!%p15_p3) target bundleno = 4 (0x4), region = 80 }
 0x48a   :  { %461 = vsyncpa [#allocation3], 1 }
 0x48b   :  { %463 = vsyncpa [#allocation3 + $0x1], 1 }
 0x48c   :  { %464 = vsyncpa [#allocation5], 1 }

</bundles_post_ra>
